<compile_context>
chip_gen: v5e
topology: v5e:2x2
jax: 0.10.0
libtpu: 0.0.40
codegen_flags: <defaults>
</compile_context>

<pallas_src>
import math
from functools import partial

import jax
import jax.numpy as jnp
import numpy as np
from jax.experimental import pallas as pl
from jax.experimental.pallas import tpu as pltpu

EPS = 1e-6


def _rms_norm(x, w):
    # VisCPM LayerNorm: RMS norm (no mean subtraction), stats in fp32, scaled by weight.
    var = jnp.mean(x * x, axis=-1, keepdims=True)
    return x * jax.lax.rsqrt(var + EPS) * w


def _gelu_tanh(x):
    # TODO(synk): torch.nn.GELU() is erf-based; tanh approximation used (Mosaic-friendly EUP path).
    c = math.sqrt(2.0 / math.pi)
    return 0.5 * x * (1.0 + jnp.tanh(c * (x + 0.044715 * x * x * x)))


def encoder_kernel(hs_ref, mask_ref, pb_ref,
                   ln_att_ref, wqkv_ref, wo_ref,
                   ln_ffn_ref, w01_ref, wout_ref, ln_out_ref,
                   out_ref,
                   h_carry, mb_ref,
                   *, num_heads, dim_head, dim_ff):
    H, dh, F = num_heads, dim_head, dim_ff
    E = H * dh
    layer = pl.program_id(1)

    @pl.when(layer == 0)
    def _():
        h_carry[...] = hs_ref[0]                       # (S, D) f32 residual stream
        # additive mask bias hoisted out of the layer loop (computed once per batch elt)
        mb_ref[...] = (mask_ref[0] - 1.0) * 1e30       # 0 where valid, -1e30 where masked

    h = h_carry[...]                                   # (S, D) f32
    mask = mask_ref[0]                                 # (S, S) f32 in {0, 1}

    # ---------------- self-attention block ----------------
    x = _rms_norm(h, ln_att_ref[0]).astype(jnp.bfloat16)          # (S, D) bf16 MXU input

    # fused QKV: one wide matmul (S,D)@(D,3E); 1/sqrt(dh) pre-folded into the Q columns
    qkv = jnp.dot(x, wqkv_ref[0], preferred_element_type=jnp.float32)    # (S, 3E) f32
    qkv = qkv.astype(jnp.bfloat16)

    # head split: static lane-slices stacked on a leading batch dim (no (H,S,D) broadcast)
    def _split_heads(off):
        return jnp.stack(
            [qkv[:, off + hh * dh: off + (hh + 1) * dh] for hh in range(H)], axis=0)

    q = _split_heads(0)          # (H, S, dh) bf16, already scaled by 1/sqrt(dh)
    k = _split_heads(E)
    v = _split_heads(2 * E)

    # score: transposed-RHS matmul path (contraction on the last dim of both operands)
    score = jnp.einsum('hqe,hke->hqk', q, k,
                       preferred_element_type=jnp.float32)        # (H, S, S) f32
    score = score + pb_ref[...] + mb_ref[...][None]

    # softmax in f32 (stable); denominator reciprocal on the EUP
    score = score - jnp.max(score, axis=-1, keepdims=True)
    p = jnp.exp(score)
    p = p * pl.reciprocal(jnp.sum(p, axis=-1, keepdims=True), approx=True)
    p = p * mask[None]                                            # masked_fill(0.) after softmax

    o = jnp.einsum('hqk,hke->hqe', p.astype(jnp.bfloat16), v,
                   preferred_element_type=jnp.float32)            # (H, S, dh) f32

    # merge heads (lane concat) and project with ONE (S,E)@(E,D) matmul
    o2d = jnp.concatenate([o[hh] for hh in range(H)], axis=-1).astype(jnp.bfloat16)  # (S, E)
    h = h + jnp.dot(o2d, wo_ref[0], preferred_element_type=jnp.float32)

    # ---------------- gated-GELU feed-forward block ----------------
    x = _rms_norm(h, ln_ffn_ref[0]).astype(jnp.bfloat16)
    gu = jnp.dot(x, w01_ref[0], preferred_element_type=jnp.float32)      # (S, 2F) fused W0|W1
    gated = _gelu_tanh(gu[:, :F]) * gu[:, F:]
    h = h + jnp.dot(gated.astype(jnp.bfloat16), wout_ref[0],
                    preferred_element_type=jnp.float32)

    h_carry[...] = h

    @pl.when(layer == pl.num_programs(1) - 1)
    def _():
        out_ref[0] = _rms_norm(h, ln_out_ref[...]).astype(out_ref.dtype)


def _vmem_limit_bytes():
    # feedback #8: size the scoped-VMEM limit per generation (~3/4 of physical).
    try:
        cap = getattr(pltpu.get_tpu_info(), "vmem_capacity_bytes", None)
        if cap:
            return int(cap) * 3 // 4
    except Exception:
        pass
    return 48 * 1024 * 1024


def prepare_params(params, num_heads, dim_head):
    """One-time conversion of reference-layout params to kernel layout (hoisted out of
    the jitted forward): fuse Q/K/V into (L,D,3E), fold 1/sqrt(dh) into the Q columns,
    fuse W0/W1 into (L,D,2F), cast all matmul weights to bf16."""
    (ln_att, wq_t, wk_t, wv_t, wo_t, ln_ffn, w0_t, w1_t, wout_t, ln_out) = params
    scale = 1.0 / math.sqrt(dim_head)
    wqkv = jnp.concatenate([wq_t * scale, wk_t, wv_t], axis=-1).astype(jnp.bfloat16)  # (L,D,3E)
    wo = wo_t.astype(jnp.bfloat16)                                                    # (L,E,D)
    w01 = jnp.concatenate([w0_t, w1_t], axis=-1).astype(jnp.bfloat16)                 # (L,D,2F)
    wout = wout_t.astype(jnp.bfloat16)                                                # (L,F,D)
    return (ln_att.astype(jnp.float32), wqkv, wo,
            ln_ffn.astype(jnp.float32), w01, wout, ln_out.astype(jnp.float32))


@jax.jit
def encoder_forward(hidden_states, attention_mask, position_bias, kparams):
    (ln_att, wqkv, wo, ln_ffn, w01, wout, ln_out) = kparams
    B, S, D = hidden_states.shape
    H = position_bias.shape[0]
    L = ln_att.shape[0]
    E = wo.shape[1]
    dh = E // H
    F = wout.shape[1]

    hs = hidden_states.astype(jnp.float32)
    mask_f = attention_mask.astype(jnp.float32)
    pb_f = position_bias.astype(jnp.float32)

    kernel = partial(encoder_kernel, num_heads=H, dim_head=dh, dim_ff=F)

    grid_spec = pltpu.PrefetchScalarGridSpec(
        num_scalar_prefetch=0,
        grid=(B, L),                                     # batch (parallel), layer (carry)
        in_specs=[
            pl.BlockSpec((1, S, D), lambda b, l: (b, 0, 0)),        # hidden states
            pl.BlockSpec((1, S, S), lambda b, l: (b, 0, 0)),        # attention mask
            pl.BlockSpec((H, S, S), lambda b, l: (0, 0, 0)),        # position bias (grid-const)
            pl.BlockSpec((1, 1, D), lambda b, l: (l, 0, 0)),        # ln before attention
            pl.BlockSpec((1, D, 3 * E), lambda b, l: (l, 0, 0)),    # fused Wqkv
            pl.BlockSpec((1, E, D), lambda b, l: (l, 0, 0)),        # Wo
            pl.BlockSpec((1, 1, D), lambda b, l: (l, 0, 0)),        # ln before ffn
            pl.BlockSpec((1, D, 2 * F), lambda b, l: (l, 0, 0)),    # fused W0 | W1
            pl.BlockSpec((1, F, D), lambda b, l: (l, 0, 0)),        # Wout
            pl.BlockSpec((1, D), lambda b, l: (0, 0)),              # final layernorm weight
        ],
        out_specs=pl.BlockSpec((1, S, D), lambda b, l: (b, 0, 0)),
        scratch_shapes=[pltpu.VMEM((S, D), jnp.float32),   # residual-stream carry across layers
                        pltpu.VMEM((S, S), jnp.float32)],  # hoisted additive mask bias
    )

    out = pl.pallas_call(
        kernel,
        out_shape=jax.ShapeDtypeStruct((B, S, D), jnp.float32),
        grid_spec=grid_spec,
        compiler_params=pltpu.CompilerParams(
            dimension_semantics=("parallel", "arbitrary"),
            vmem_limit_bytes=_vmem_limit_bytes()),
    )(hs, mask_f, pb_f, ln_att, wqkv, wo, ln_ffn, w01, wout, ln_out)
    return out


def init_params(key, num_layers, dim_model, dim_ff, num_heads, dim_head):
    """Deterministic synthetic params. PyTorch Linear weights are (out,in); we store them
    pre-transposed to (in,out) so x @ W^T is a plain matmul. Kept in f32 here; the
    one-time `prepare_params` converts to fused / bf16 kernel layout."""
    E = num_heads * dim_head
    std = 0.02
    keys = jax.random.split(key, num_layers * 7)
    wq, wk, wv, wo, w0, w1, wout = [], [], [], [], [], [], []
    for l in range(num_layers):
        k = keys[l * 7:(l + 1) * 7]
        wq.append(jax.random.normal(k[0], (E, dim_model), jnp.float32) * std)
        wk.append(jax.random.normal(k[1], (E, dim_model), jnp.float32) * std)
        wv.append(jax.random.normal(k[2], (E, dim_model), jnp.float32) * std)
        wo.append(jax.random.normal(k[3], (dim_model, E), jnp.float32) * std)
        w0.append(jax.random.normal(k[4], (dim_ff, dim_model), jnp.float32) * std)
        w1.append(jax.random.normal(k[5], (dim_ff, dim_model), jnp.float32) * std)
        wout.append(jax.random.normal(k[6], (dim_model, dim_ff), jnp.float32) * std)
    ln_att = jnp.ones((num_layers, 1, dim_model), jnp.float32)
    ln_ffn = jnp.ones((num_layers, 1, dim_model), jnp.float32)
    ln_out = jnp.ones((1, dim_model), jnp.float32)
    stack_t = lambda ws: jnp.stack([w.T for w in ws])        # (L, in, out)
    return (ln_att, stack_t(wq), stack_t(wk), stack_t(wv), stack_t(wo),
            ln_ffn, stack_t(w0), stack_t(w1), stack_t(wout), ln_out)


def encoder_reference(hidden_states, attention_mask, position_bias, params):
    """Pure-JAX f32 reference mirroring the PyTorch forward (use_cache=False)."""
    (ln_att, wq_t, wk_t, wv_t, wo_t, ln_ffn, w0_t, w1_t, wout_t, ln_out) = params
    B, S, D = hidden_states.shape
    H = position_bias.shape[0]
    E = wq_t.shape[-1]
    dh = E // H
    h = hidden_states.astype(jnp.float32)
    mask = attention_mask > 0

    def rms(x, w):
        var = jnp.mean(x * x, axis=-1, keepdims=True)
        return x * jax.lax.rsqrt(var + EPS) * w

    for l in range(ln_att.shape[0]):
        x = rms(h, ln_att[l, 0])
        q = (x @ wq_t[l]).reshape(B, S, H, dh).transpose(0, 2, 1, 3)
        k = (x @ wk_t[l]).reshape(B, S, H, dh).transpose(0, 2, 1, 3)
        v = (x @ wv_t[l]).reshape(B, S, H, dh).transpose(0, 2, 1, 3)
        score = jnp.einsum('bhqd,bhkd->bhqk', q, k) / math.sqrt(dh)
        score = score + position_bias[None]
        score = jnp.where(mask[:, None], score, -1e30)
        p = jax.nn.softmax(score, axis=-1)
        p = jnp.where(mask[:, None], p, 0.0)
        o = jnp.einsum('bhqk,bhkd->bhqd', p, v).transpose(0, 2, 1, 3).reshape(B, S, E)
        h = h + o @ wo_t[l]
        x = rms(h, ln_ffn[l, 0])
        h = h + (_gelu_tanh(x @ w0_t[l]) * (x @ w1_t[l])) @ wout_t[l]
    return rms(h, ln_out[0])


if __name__ == "__main__":
    num_layers, dim_model, dim_ff, num_heads, dim_head = 2, 32, 64, 4, 8
    B, S = 2, 8

    key = jax.random.PRNGKey(0)
    k_hs, k_pb, k_par = jax.random.split(key, 3)

    hidden_states = jax.random.normal(k_hs, (B, S, dim_model), jnp.float32)
    position_bias = jax.random.normal(k_pb, (num_heads, S, S), jnp.float32) * 0.1
    attention_mask = jnp.ones((B, S, S), jnp.float32)
    attention_mask = attention_mask.at[1, :, S - 1].set(0.0)   # exercise masking

    params = init_params(k_par, num_layers, dim_model, dim_ff, num_heads, dim_head)
    kparams = prepare_params(params, num_heads, dim_head)      # one-time, outside the jitted fwd

    out = encoder_forward(hidden_states, attention_mask, position_bias, kparams)
    out = jax.block_until_ready(out)

    ref = encoder_reference(hidden_states, attention_mask, position_bias, params)
    # kernel computes matmuls in bf16 (module defaults to torch.half); compare vs f32 ref
    np.testing.assert_allclose(np.asarray(out), np.asarray(ref), rtol=2e-2, atol=2e-2)

    assert out.shape == (B, S, dim_model)
    print("KERNEL_OK")
</pallas_src>

<mosaic_0001>
module attributes {stable_mosaic.version = 11 : i64} {
  func.func @encoder_kernel(%arg0: i32, %arg1: i32, %arg2: memref<1x8x32xf32, #tpu.memory_space<vmem>>, %arg3: memref<1x8x8xf32, #tpu.memory_space<vmem>>, %arg4: memref<4x8x8xf32, #tpu.memory_space<vmem>>, %arg5: memref<1x1x32xf32, #tpu.memory_space<vmem>>, %arg6: memref<1x32x96xbf16, #tpu.memory_space<vmem>>, %arg7: memref<1x32x32xbf16, #tpu.memory_space<vmem>>, %arg8: memref<1x1x32xf32, #tpu.memory_space<vmem>>, %arg9: memref<1x32x128xbf16, #tpu.memory_space<vmem>>, %arg10: memref<1x64x32xbf16, #tpu.memory_space<vmem>>, %arg11: memref<1x32xf32, #tpu.memory_space<vmem>>, %arg12: memref<1x8x32xf32, #tpu.memory_space<vmem>>, %arg13: memref<8x32xf32, #tpu.memory_space<vmem>>, %arg14: memref<8x8xf32, #tpu.memory_space<vmem>>) attributes {dimension_semantics = [#tpu.dimension_semantics<parallel>, #tpu.dimension_semantics<arbitrary>], iteration_bounds = array<i64: 2, 2>, scalar_prefetch = 0 : i64, scratch_operands = 2 : i64, tpu.core_type = #tpu.core_type<tc>, window_params = [{transform_indices = @transform_0, window_bounds = array<i64: 1, 8, 32>}, {transform_indices = @transform_1, window_bounds = array<i64: 1, 8, 8>}, {pipeline_mode = #tpu.pipeline_mode<synchronous>, transform_indices = @transform_2, window_bounds = array<i64: 4, 8, 8>}, {transform_indices = @transform_3, window_bounds = array<i64: 1, 1, 32>}, {transform_indices = @transform_4, window_bounds = array<i64: 1, 32, 96>}, {transform_indices = @transform_5, window_bounds = array<i64: 1, 32, 32>}, {transform_indices = @transform_6, window_bounds = array<i64: 1, 1, 32>}, {transform_indices = @transform_7, window_bounds = array<i64: 1, 32, 128>}, {transform_indices = @transform_8, window_bounds = array<i64: 1, 64, 32>}, {pipeline_mode = #tpu.pipeline_mode<synchronous>, transform_indices = @transform_9, window_bounds = array<i64: 1, 32>}, {transform_indices = @transform_10, window_bounds = array<i64: 1, 8, 32>}]} {
    %c0_i32 = arith.constant 0 : i32
    %0 = arith.cmpi eq, %arg1, %c0_i32 : i32
    %1 = arith.extui %0 : i1 to i32
    %c0_i32_0 = arith.constant 0 : i32
    %2 = arith.cmpi ne, %1, %c0_i32_0 : i32
    scf.if %2 {
      %c0_48 = arith.constant 0 : index
      %c0_49 = arith.constant 0 : index
      %c0_50 = arith.constant 0 : index
      %131 = vector.load %arg2[%c0_48, %c0_49, %c0_50] : memref<1x8x32xf32, #tpu.memory_space<vmem>>, vector<1x8x32xf32>
      %132 = vector.shape_cast %131 : vector<1x8x32xf32> to vector<8x32xf32>
      %c0_51 = arith.constant 0 : index
      %c0_52 = arith.constant 0 : index
      %133 = vector.load %arg13[%c0_51, %c0_52] : memref<8x32xf32, #tpu.memory_space<vmem>>, vector<8x32xf32>
      tpu.vector_store %arg13[%c0_51, %c0_52], %132 {strides = array<i32>} : memref<8x32xf32, #tpu.memory_space<vmem>>, vector<8x32xf32>,
      %c0_53 = arith.constant 0 : index
      %c0_54 = arith.constant 0 : index
      %c0_55 = arith.constant 0 : index
      %134 = vector.load %arg3[%c0_53, %c0_54, %c0_55] : memref<1x8x8xf32, #tpu.memory_space<vmem>>, vector<1x8x8xf32>
      %135 = vector.shape_cast %134 : vector<1x8x8xf32> to vector<8x8xf32>
      %cst_56 = arith.constant 1.000000e+00 : f32
      %136 = vector.broadcast %cst_56 : f32 to vector<8x8xf32>
      %137 = arith.subf %135, %136 : vector<8x8xf32>
      %cst_57 = arith.constant 1.000000e+30 : f32
      %138 = vector.broadcast %cst_57 : f32 to vector<8x8xf32>
      %139 = arith.mulf %137, %138 : vector<8x8xf32>
      %c0_58 = arith.constant 0 : index
      %c0_59 = arith.constant 0 : index
      %140 = vector.load %arg14[%c0_58, %c0_59] : memref<8x8xf32, #tpu.memory_space<vmem>>, vector<8x8xf32>
      tpu.vector_store %arg14[%c0_58, %c0_59], %139 {strides = array<i32>} : memref<8x8xf32, #tpu.memory_space<vmem>>, vector<8x8xf32>,
    } else {
    }
    %c0 = arith.constant 0 : index
    %c0_1 = arith.constant 0 : index
    %3 = vector.load %arg13[%c0, %c0_1] : memref<8x32xf32, #tpu.memory_space<vmem>>, vector<8x32xf32>
    %c0_2 = arith.constant 0 : index
    %c0_3 = arith.constant 0 : index
    %c0_4 = arith.constant 0 : index
    %4 = vector.load %arg3[%c0_2, %c0_3, %c0_4] : memref<1x8x8xf32, #tpu.memory_space<vmem>>, vector<1x8x8xf32>
    %5 = vector.shape_cast %4 : vector<1x8x8xf32> to vector<8x8xf32>
    %c0_5 = arith.constant 0 : index
    %c0_6 = arith.constant 0 : index
    %c0_7 = arith.constant 0 : index
    %6 = vector.load %arg5[%c0_5, %c0_6, %c0_7] : memref<1x1x32xf32, #tpu.memory_space<vmem>>, vector<1x1x32xf32>
    %7 = vector.shape_cast %6 : vector<1x1x32xf32> to vector<1x32xf32>
    %8 = arith.mulf %3, %3 : vector<8x32xf32>
    %cst = arith.constant dense<0.000000e+00> : vector<8xf32>
    %9 = vector.multi_reduction <add>, %8, %cst [1] : vector<8x32xf32> to vector<8xf32>
    %10 = vector.shape_cast %9 : vector<8xf32> to vector<8x1xf32>
    %cst_8 = arith.constant 3.200000e+01 : f32
    %11 = vector.broadcast %cst_8 : f32 to vector<8x1xf32>
    %12 = arith.divf %10, %11 : vector<8x1xf32>
    %cst_9 = arith.constant 9.99999997E-7 : f32
    %13 = vector.broadcast %cst_9 : f32 to vector<8x1xf32>
    %14 = arith.addf %12, %13 : vector<8x1xf32>
    %15 = math.rsqrt %14 : vector<8x1xf32>
    %16 = vector.broadcast %15 : vector<8x1xf32> to vector<8x32xf32>
    %17 = arith.mulf %3, %16 : vector<8x32xf32>
    %18 = vector.broadcast %7 : vector<1x32xf32> to vector<8x32xf32>
    %19 = arith.mulf %17, %18 : vector<8x32xf32>
    %20 = arith.truncf %19 : vector<8x32xf32> to vector<8x32xbf16>
    %c0_10 = arith.constant 0 : index
    %c0_11 = arith.constant 0 : index
    %c0_12 = arith.constant 0 : index
    %21 = vector.load %arg6[%c0_10, %c0_11, %c0_12] : memref<1x32x96xbf16, #tpu.memory_space<vmem>>, vector<1x32x96xbf16>
    %22 = vector.shape_cast %21 : vector<1x32x96xbf16> to vector<32x96xbf16>
    %cst_13 = arith.constant dense<0.000000e+00> : vector<8x96xf32>
    %23 = tpu.matmul %20, %22, %cst_13 {dimension_numbers = #tpu.dot_dimension_numbers<[1], [0], [0], [1], [0, 0, 1, 1], [], []>} : vector<8x32xbf16>, vector<32x96xbf16>, vector<8x96xf32> -> vector<8x96xf32>
    %24 = arith.truncf %23 : vector<8x96xf32> to vector<8x96xbf16>
    %25 = vector.extract_strided_slice %24 {offsets = [0, 0], sizes = [8, 8], strides = [1, 1]} : vector<8x96xbf16> to vector<8x8xbf16>
    %26 = vector.extract_strided_slice %24 {offsets = [0, 8], sizes = [8, 8], strides = [1, 1]} : vector<8x96xbf16> to vector<8x8xbf16>
    %27 = vector.extract_strided_slice %24 {offsets = [0, 16], sizes = [8, 8], strides = [1, 1]} : vector<8x96xbf16> to vector<8x8xbf16>
    %28 = vector.extract_strided_slice %24 {offsets = [0, 24], sizes = [8, 8], strides = [1, 1]} : vector<8x96xbf16> to vector<8x8xbf16>
    %29 = vector.shape_cast %25 : vector<8x8xbf16> to vector<1x8x8xbf16>
    %30 = vector.shape_cast %26 : vector<8x8xbf16> to vector<1x8x8xbf16>
    %31 = vector.shape_cast %27 : vector<8x8xbf16> to vector<1x8x8xbf16>
    %32 = vector.shape_cast %28 : vector<8x8xbf16> to vector<1x8x8xbf16>
    %33 = tpu.concatenate %29, %30, %31, %32 in 0 : vector<1x8x8xbf16>, vector<1x8x8xbf16>, vector<1x8x8xbf16>, vector<1x8x8xbf16> -> vector<4x8x8xbf16>
    %34 = vector.extract_strided_slice %24 {offsets = [0, 32], sizes = [8, 8], strides = [1, 1]} : vector<8x96xbf16> to vector<8x8xbf16>
    %35 = vector.extract_strided_slice %24 {offsets = [0, 40], sizes = [8, 8], strides = [1, 1]} : vector<8x96xbf16> to vector<8x8xbf16>
    %36 = vector.extract_strided_slice %24 {offsets = [0, 48], sizes = [8, 8], strides = [1, 1]} : vector<8x96xbf16> to vector<8x8xbf16>
    %37 = vector.extract_strided_slice %24 {offsets = [0, 56], sizes = [8, 8], strides = [1, 1]} : vector<8x96xbf16> to vector<8x8xbf16>
    %38 = vector.shape_cast %34 : vector<8x8xbf16> to vector<1x8x8xbf16>
    %39 = vector.shape_cast %35 : vector<8x8xbf16> to vector<1x8x8xbf16>
    %40 = vector.shape_cast %36 : vector<8x8xbf16> to vector<1x8x8xbf16>
    %41 = vector.shape_cast %37 : vector<8x8xbf16> to vector<1x8x8xbf16>
    %42 = tpu.concatenate %38, %39, %40, %41 in 0 : vector<1x8x8xbf16>, vector<1x8x8xbf16>, vector<1x8x8xbf16>, vector<1x8x8xbf16> -> vector<4x8x8xbf16>
    %43 = vector.extract_strided_slice %24 {offsets = [0, 64], sizes = [8, 8], strides = [1, 1]} : vector<8x96xbf16> to vector<8x8xbf16>
    %44 = vector.extract_strided_slice %24 {offsets = [0, 72], sizes = [8, 8], strides = [1, 1]} : vector<8x96xbf16> to vector<8x8xbf16>
    %45 = vector.extract_strided_slice %24 {offsets = [0, 80], sizes = [8, 8], strides = [1, 1]} : vector<8x96xbf16> to vector<8x8xbf16>
    %46 = vector.extract_strided_slice %24 {offsets = [0, 88], sizes = [8, 8], strides = [1, 1]} : vector<8x96xbf16> to vector<8x8xbf16>
    %47 = vector.shape_cast %43 : vector<8x8xbf16> to vector<1x8x8xbf16>
    %48 = vector.shape_cast %44 : vector<8x8xbf16> to vector<1x8x8xbf16>
    %49 = vector.shape_cast %45 : vector<8x8xbf16> to vector<1x8x8xbf16>
    %50 = vector.shape_cast %46 : vector<8x8xbf16> to vector<1x8x8xbf16>
    %51 = tpu.concatenate %47, %48, %49, %50 in 0 : vector<1x8x8xbf16>, vector<1x8x8xbf16>, vector<1x8x8xbf16>, vector<1x8x8xbf16> -> vector<4x8x8xbf16>
    "tpu.trace_start"() <{level = 10 : i32, message = "hqe,hke->hqk"}> : () -> ()
    %cst_14 = arith.constant dense<0.000000e+00> : vector<4x8x8xf32>
    %52 = tpu.matmul %33, %42, %cst_14 {dimension_numbers = #tpu.dot_dimension_numbers<[2], [2], [1], [1], [0, 0, 0, 1, 1, 1], [0], [0]>} : vector<4x8x8xbf16>, vector<4x8x8xbf16>, vector<4x8x8xf32> -> vector<4x8x8xf32>
    "tpu.trace_stop"() : () -> ()
    %c0_15 = arith.constant 0 : index
    %c0_16 = arith.constant 0 : index
    %c0_17 = arith.constant 0 : index
    %53 = vector.load %arg4[%c0_15, %c0_16, %c0_17] : memref<4x8x8xf32, #tpu.memory_space<vmem>>, vector<4x8x8xf32>
    %54 = arith.addf %52, %53 : vector<4x8x8xf32>
    %c0_18 = arith.constant 0 : index
    %c0_19 = arith.constant 0 : index
    %55 = vector.load %arg14[%c0_18, %c0_19] : memref<8x8xf32, #tpu.memory_space<vmem>>, vector<8x8xf32>
    %56 = vector.shape_cast %55 : vector<8x8xf32> to vector<1x8x8xf32>
    %57 = vector.broadcast %56 : vector<1x8x8xf32> to vector<4x8x8xf32>
    %58 = arith.addf %54, %57 : vector<4x8x8xf32>
    %cst_20 = arith.constant dense<0xFF800000> : vector<4x8xf32>
    %59 = vector.multi_reduction <maximumf>, %58, %cst_20 [2] : vector<4x8x8xf32> to vector<4x8xf32>
    %60 = vector.shape_cast %59 : vector<4x8xf32> to vector<4x8x1xf32>
    %61 = vector.broadcast %60 : vector<4x8x1xf32> to vector<4x8x8xf32>
    %62 = arith.subf %58, %61 : vector<4x8x8xf32>
    %63 = math.exp %62 : vector<4x8x8xf32>
    %cst_21 = arith.constant dense<0.000000e+00> : vector<4x8xf32>
    %64 = vector.multi_reduction <add>, %63, %cst_21 [2] : vector<4x8x8xf32> to vector<4x8xf32>
    %65 = vector.shape_cast %64 : vector<4x8xf32> to vector<4x8x1xf32>
    %66 = tpu.reciprocal %65 {approx = true} : vector<4x8x1xf32> -> vector<4x8x1xf32>
    %67 = vector.broadcast %66 : vector<4x8x1xf32> to vector<4x8x8xf32>
    %68 = arith.mulf %63, %67 : vector<4x8x8xf32>
    %69 = vector.shape_cast %5 : vector<8x8xf32> to vector<1x8x8xf32>
    %70 = vector.broadcast %69 : vector<1x8x8xf32> to vector<4x8x8xf32>
    %71 = arith.mulf %68, %70 : vector<4x8x8xf32>
    %72 = arith.truncf %71 : vector<4x8x8xf32> to vector<4x8x8xbf16>
    "tpu.trace_start"() <{level = 10 : i32, message = "hqk,hke->hqe"}> : () -> ()
    %cst_22 = arith.constant dense<0.000000e+00> : vector<4x8x8xf32>
    %73 = tpu.matmul %72, %51, %cst_22 {dimension_numbers = #tpu.dot_dimension_numbers<[2], [1], [1], [2], [0, 0, 0, 1, 1, 2], [0], [0]>} : vector<4x8x8xbf16>, vector<4x8x8xbf16>, vector<4x8x8xf32> -> vector<4x8x8xf32>
    "tpu.trace_stop"() : () -> ()
    %74 = vector.extract_strided_slice %73 {offsets = [0, 0, 0], sizes = [1, 8, 8], strides = [1, 1, 1]} : vector<4x8x8xf32> to vector<1x8x8xf32>
    %75 = vector.shape_cast %74 : vector<1x8x8xf32> to vector<8x8xf32>
    %76 = vector.extract_strided_slice %73 {offsets = [1, 0, 0], sizes = [1, 8, 8], strides = [1, 1, 1]} : vector<4x8x8xf32> to vector<1x8x8xf32>
    %77 = vector.shape_cast %76 : vector<1x8x8xf32> to vector<8x8xf32>
    %78 = vector.extract_strided_slice %73 {offsets = [2, 0, 0], sizes = [1, 8, 8], strides = [1, 1, 1]} : vector<4x8x8xf32> to vector<1x8x8xf32>
    %79 = vector.shape_cast %78 : vector<1x8x8xf32> to vector<8x8xf32>
    %80 = vector.extract_strided_slice %73 {offsets = [3, 0, 0], sizes = [1, 8, 8], strides = [1, 1, 1]} : vector<4x8x8xf32> to vector<1x8x8xf32>
    %81 = vector.shape_cast %80 : vector<1x8x8xf32> to vector<8x8xf32>
    %82 = tpu.concatenate %75, %77, %79, %81 in 1 : vector<8x8xf32>, vector<8x8xf32>, vector<8x8xf32>, vector<8x8xf32> -> vector<8x32xf32>
    %83 = arith.truncf %82 : vector<8x32xf32> to vector<8x32xbf16>
    %c0_23 = arith.constant 0 : index
    %c0_24 = arith.constant 0 : index
    %c0_25 = arith.constant 0 : index
    %84 = vector.load %arg7[%c0_23, %c0_24, %c0_25] : memref<1x32x32xbf16, #tpu.memory_space<vmem>>, vector<1x32x32xbf16>
    %85 = vector.shape_cast %84 : vector<1x32x32xbf16> to vector<32x32xbf16>
    %cst_26 = arith.constant dense<0.000000e+00> : vector<8x32xf32>
    %86 = tpu.matmul %83, %85, %cst_26 {dimension_numbers = #tpu.dot_dimension_numbers<[1], [0], [0], [1], [0, 0, 1, 1], [], []>} : vector<8x32xbf16>, vector<32x32xbf16>, vector<8x32xf32> -> vector<8x32xf32>
    %87 = arith.addf %3, %86 : vector<8x32xf32>
    %c0_27 = arith.constant 0 : index
    %c0_28 = arith.constant 0 : index
    %c0_29 = arith.constant 0 : index
    %88 = vector.load %arg8[%c0_27, %c0_28, %c0_29] : memref<1x1x32xf32, #tpu.memory_space<vmem>>, vector<1x1x32xf32>
    %89 = vector.shape_cast %88 : vector<1x1x32xf32> to vector<1x32xf32>
    %90 = arith.mulf %87, %87 : vector<8x32xf32>
    %cst_30 = arith.constant dense<0.000000e+00> : vector<8xf32>
    %91 = vector.multi_reduction <add>, %90, %cst_30 [1] : vector<8x32xf32> to vector<8xf32>
    %92 = vector.shape_cast %91 : vector<8xf32> to vector<8x1xf32>
    %cst_31 = arith.constant 3.200000e+01 : f32
    %93 = vector.broadcast %cst_31 : f32 to vector<8x1xf32>
    %94 = arith.divf %92, %93 : vector<8x1xf32>
    %cst_32 = arith.constant 9.99999997E-7 : f32
    %95 = vector.broadcast %cst_32 : f32 to vector<8x1xf32>
    %96 = arith.addf %94, %95 : vector<8x1xf32>
    %97 = math.rsqrt %96 : vector<8x1xf32>
    %98 = vector.broadcast %97 : vector<8x1xf32> to vector<8x32xf32>
    %99 = arith.mulf %87, %98 : vector<8x32xf32>
    %100 = vector.broadcast %89 : vector<1x32xf32> to vector<8x32xf32>
    %101 = arith.mulf %99, %100 : vector<8x32xf32>
    %102 = arith.truncf %101 : vector<8x32xf32> to vector<8x32xbf16>
    %c0_33 = arith.constant 0 : index
    %c0_34 = arith.constant 0 : index
    %c0_35 = arith.constant 0 : index
    %103 = vector.load %arg9[%c0_33, %c0_34, %c0_35] : memref<1x32x128xbf16, #tpu.memory_space<vmem>>, vector<1x32x128xbf16>
    %104 = vector.shape_cast %103 : vector<1x32x128xbf16> to vector<32x128xbf16>
    %cst_36 = arith.constant dense<0.000000e+00> : vector<8x128xf32>
    %105 = tpu.matmul %102, %104, %cst_36 {dimension_numbers = #tpu.dot_dimension_numbers<[1], [0], [0], [1], [0, 0, 1, 1], [], []>} : vector<8x32xbf16>, vector<32x128xbf16>, vector<8x128xf32> -> vector<8x128xf32>
    %106 = vector.extract_strided_slice %105 {offsets = [0, 0], sizes = [8, 64], strides = [1, 1]} : vector<8x128xf32> to vector<8x64xf32>
    %cst_37 = arith.constant 5.000000e-01 : f32
    %107 = vector.broadcast %cst_37 : f32 to vector<8x64xf32>
    %108 = arith.mulf %107, %106 : vector<8x64xf32>
    %cst_38 = arith.constant 4.471500e-02 : f32
    %109 = vector.broadcast %cst_38 : f32 to vector<8x64xf32>
    %110 = arith.mulf %109, %106 : vector<8x64xf32>
    %111 = arith.mulf %110, %106 : vector<8x64xf32>
    %112 = arith.mulf %111, %106 : vector<8x64xf32>
    %113 = arith.addf %106, %112 : vector<8x64xf32>
    %cst_39 = arith.constant 0.797884583 : f32
    %114 = vector.broadcast %cst_39 : f32 to vector<8x64xf32>
    %115 = arith.mulf %114, %113 : vector<8x64xf32>
    %116 = math.tanh %115 : vector<8x64xf32>
    %cst_40 = arith.constant 1.000000e+00 : f32
    %117 = vector.broadcast %cst_40 : f32 to vector<8x64xf32>
    %118 = arith.addf %117, %116 : vector<8x64xf32>
    %119 = arith.mulf %108, %118 : vector<8x64xf32>
    %120 = vector.extract_strided_slice %105 {offsets = [0, 64], sizes = [8, 64], strides = [1, 1]} : vector<8x128xf32> to vector<8x64xf32>
    %121 = arith.mulf %119, %120 : vector<8x64xf32>
    %122 = arith.truncf %121 : vector<8x64xf32> to vector<8x64xbf16>
    %c0_41 = arith.constant 0 : index
    %c0_42 = arith.constant 0 : index
    %c0_43 = arith.constant 0 : index
    %123 = vector.load %arg10[%c0_41, %c0_42, %c0_43] : memref<1x64x32xbf16, #tpu.memory_space<vmem>>, vector<1x64x32xbf16>
    %124 = vector.shape_cast %123 : vector<1x64x32xbf16> to vector<64x32xbf16>
    %cst_44 = arith.constant dense<0.000000e+00> : vector<8x32xf32>
    %125 = tpu.matmul %122, %124, %cst_44 {dimension_numbers = #tpu.dot_dimension_numbers<[1], [0], [0], [1], [0, 0, 1, 1], [], []>} : vector<8x64xbf16>, vector<64x32xbf16>, vector<8x32xf32> -> vector<8x32xf32>
    %126 = arith.addf %87, %125 : vector<8x32xf32>
    %c0_45 = arith.constant 0 : index
    %c0_46 = arith.constant 0 : index
    %127 = vector.load %arg13[%c0_45, %c0_46] : memref<8x32xf32, #tpu.memory_space<vmem>>, vector<8x32xf32>
    tpu.vector_store %arg13[%c0_45, %c0_46], %126 {strides = array<i32>} : memref<8x32xf32, #tpu.memory_space<vmem>>, vector<8x32xf32>,
    %c1_i32 = arith.constant 1 : i32
    %128 = arith.cmpi eq, %arg1, %c1_i32 : i32
    %129 = arith.extui %128 : i1 to i32
    %c0_i32_47 = arith.constant 0 : i32
    %130 = arith.cmpi ne, %129, %c0_i32_47 : i32
    scf.if %130 {
      %c0_48 = arith.constant 0 : index
      %c0_49 = arith.constant 0 : index
      %131 = vector.load %arg11[%c0_48, %c0_49] : memref<1x32xf32, #tpu.memory_space<vmem>>, vector<1x32xf32>
      %132 = arith.mulf %126, %126 : vector<8x32xf32>
      %cst_50 = arith.constant dense<0.000000e+00> : vector<8xf32>
      %133 = vector.multi_reduction <add>, %132, %cst_50 [1] : vector<8x32xf32> to vector<8xf32>
      %134 = vector.shape_cast %133 : vector<8xf32> to vector<8x1xf32>
      %cst_51 = arith.constant 3.200000e+01 : f32
      %135 = vector.broadcast %cst_51 : f32 to vector<8x1xf32>
      %136 = arith.divf %134, %135 : vector<8x1xf32>
      %cst_52 = arith.constant 9.99999997E-7 : f32
      %137 = vector.broadcast %cst_52 : f32 to vector<8x1xf32>
      %138 = arith.addf %136, %137 : vector<8x1xf32>
      %139 = math.rsqrt %138 : vector<8x1xf32>
      %140 = vector.broadcast %139 : vector<8x1xf32> to vector<8x32xf32>
      %141 = arith.mulf %126, %140 : vector<8x32xf32>
      %142 = vector.broadcast %131 : vector<1x32xf32> to vector<8x32xf32>
      %143 = arith.mulf %141, %142 : vector<8x32xf32>
      %c0_53 = arith.constant 0 : index
      %c0_54 = arith.constant 0 : index
      %c0_55 = arith.constant 0 : index
      %144 = vector.load %arg12[%c0_53, %c0_54, %c0_55] : memref<1x8x32xf32, #tpu.memory_space<vmem>>, vector<1x8x32xf32>
      %145 = vector.shape_cast %144 : vector<1x8x32xf32> to vector<8x32xf32>
      %146 = vector.shape_cast %143 : vector<8x32xf32> to vector<1x8x32xf32>
      tpu.vector_store %arg12[%c0_53, %c0_54, %c0_55], %146 {strides = array<i32>} : memref<1x8x32xf32, #tpu.memory_space<vmem>>, vector<1x8x32xf32>,
    } else {
    }
    return
  }
  func.func @transform_0(%arg0: i32, %arg1: i32) -> (i32, i32, i32) {
    %c0_i32 = arith.constant 0 : i32
    %c0_i32_0 = arith.constant 0 : i32
    %c0_i32_1 = arith.constant 0 : i32
    return %arg0, %c0_i32, %c0_i32_0 : i32, i32, i32
  }
  func.func @transform_1(%arg0: i32, %arg1: i32) -> (i32, i32, i32) {
    %c0_i32 = arith.constant 0 : i32
    %c0_i32_0 = arith.constant 0 : i32
    %c0_i32_1 = arith.constant 0 : i32
    return %arg0, %c0_i32, %c0_i32_0 : i32, i32, i32
  }
  func.func @transform_2(%arg0: i32, %arg1: i32) -> (i32, i32, i32) {
    %c0_i32 = arith.constant 0 : i32
    %c0_i32_0 = arith.constant 0 : i32
    %c0_i32_1 = arith.constant 0 : i32
    %c0_i32_2 = arith.constant 0 : i32
    return %c0_i32, %c0_i32_0, %c0_i32_1 : i32, i32, i32
  }
  func.func @transform_3(%arg0: i32, %arg1: i32) -> (i32, i32, i32) {
    %c0_i32 = arith.constant 0 : i32
    %c0_i32_0 = arith.constant 0 : i32
    %c0_i32_1 = arith.constant 0 : i32
    return %arg1, %c0_i32, %c0_i32_0 : i32, i32, i32
  }
  func.func @transform_4(%arg0: i32, %arg1: i32) -> (i32, i32, i32) {
    %c0_i32 = arith.constant 0 : i32
    %c0_i32_0 = arith.constant 0 : i32
    %c0_i32_1 = arith.constant 0 : i32
    return %arg1, %c0_i32, %c0_i32_0 : i32, i32, i32
  }
  func.func @transform_5(%arg0: i32, %arg1: i32) -> (i32, i32, i32) {
    %c0_i32 = arith.constant 0 : i32
    %c0_i32_0 = arith.constant 0 : i32
    %c0_i32_1 = arith.constant 0 : i32
    return %arg1, %c0_i32, %c0_i32_0 : i32, i32, i32
  }
  func.func @transform_6(%arg0: i32, %arg1: i32) -> (i32, i32, i32) {
    %c0_i32 = arith.constant 0 : i32
    %c0_i32_0 = arith.constant 0 : i32
    %c0_i32_1 = arith.constant 0 : i32
    return %arg1, %c0_i32, %c0_i32_0 : i32, i32, i32
  }
  func.func @transform_7(%arg0: i32, %arg1: i32) -> (i32, i32, i32) {
    %c0_i32 = arith.constant 0 : i32
    %c0_i32_0 = arith.constant 0 : i32
    %c0_i32_1 = arith.constant 0 : i32
    return %arg1, %c0_i32, %c0_i32_0 : i32, i32, i32
  }
  func.func @transform_8(%arg0: i32, %arg1: i32) -> (i32, i32, i32) {
    %c0_i32 = arith.constant 0 : i32
    %c0_i32_0 = arith.constant 0 : i32
    %c0_i32_1 = arith.constant 0 : i32
    return %arg1, %c0_i32, %c0_i32_0 : i32, i32, i32
  }
  func.func @transform_9(%arg0: i32, %arg1: i32) -> (i32, i32) {
    %c0_i32 = arith.constant 0 : i32
    %c0_i32_0 = arith.constant 0 : i32
    %c0_i32_1 = arith.constant 0 : i32
    return %c0_i32, %c0_i32_0 : i32, i32
  }
  func.func @transform_10(%arg0: i32, %arg1: i32) -> (i32, i32, i32) {
    %c0_i32 = arith.constant 0 : i32
    %c0_i32_0 = arith.constant 0 : i32
    %c0_i32_1 = arith.constant 0 : i32
    return %arg0, %c0_i32, %c0_i32_0 : i32, i32, i32
  }
}

</mosaic_0001>

<bundles_post_ra>
// kernel: encoder_forward.1
= control target key start
LH: loop header
LB: loop body
LE: loop exit
PB: predicated region body
PF: predicated region fallthrough
CT: control target
= control target key end

     0   :  { %s2263_s0 = inlined_call_operand.hbm [shape: f32[2,8,32], index: 0, kind: input, shape index: {}]   ;;  %s2264_s1 = inlined_call_operand.hbm [shape: f32[2,8,8], index: 1, kind: input, shape index: {}]   ;;  %s2265_s2 = inlined_call_operand.vmem [shape: f32[4,8,8], index: 2, kind: input, shape index: {}]   ;;  %s2266_s3 = inlined_call_operand.hbm [shape: f32[2,1,32], index: 3, kind: input, shape index: {}]   ;;  %s2267_s4 = inlined_call_operand.vmem [shape: bf16[2,32,96], index: 4, kind: input, shape index: {}]   ;;  %s2268_s5 = inlined_call_operand.vmem [shape: bf16[2,32,32], index: 5, kind: input, shape index: {}]   ;;  %s2269_s6 = inlined_call_operand.vmem [shape: f32[2,1,32], index: 6, kind: input, shape index: {}]   ;;  %s2270_s7 = inlined_call_operand.hbm [shape: bf16[2,32,128], index: 7, kind: input, shape index: {}]   ;;  %s2271_s8 = inlined_call_operand.vmem [shape: bf16[2,64,32], index: 8, kind: input, shape index: {}]   ;;  %s2272_s9 = inlined_call_operand.vmem [shape: f32[1,32], index: 9, kind: input, shape index: {}]   ;;  %s2273_s10 = inlined_call_operand.hbm [shape: f32[2,8,32], index: 10, kind: output, shape index: {}]  }
   0x1   :  { %2286 = sst [smem:[#allocation28_spill]] %s2263_s0 }
   0x2   :  { %2287 = sst [smem:[#allocation29_spill]] %s2264_s1 }
   0x3   :  { %2288 = sst [smem:[#allocation30_spill]] %s2265_s2 }
   0x4   :  { %2289 = sst [smem:[#allocation31_spill]] %s2266_s3 }
   0x5   :  { %2290 = sst [smem:[#allocation32_spill]] %s2267_s4 }
   0x6   :  { %2291 = sst [smem:[#allocation33_spill]] %s2268_s5 }
   0x7   :  { %2292 = sst [smem:[#allocation34_spill]] %s2269_s6 }
   0x8   :  { %2293 = sst [smem:[#allocation35_spill]] %s2270_s7 }
   0x9   :  { %2294 = sst [smem:[#allocation36_spill]] %s2271_s8 }
   0xa   :  { %2295 = sst [smem:[#allocation37_spill]] %s2272_s9 }
   0xb   :  { %2296 = sst [smem:[#allocation38_spill]] %s2273_s10 }
   0xc   :  { %15 = vsyncpa [#allocation5], 0 }
   0xd   :  { %17 = vsyncpa [#allocation5 + $0x1], 0 }
   0xe   :  { %18 = vsyncpa [#allocation8], 0 }
   0xf   :  { %20 = vsyncpa [#allocation8 + $0x1], 0 }
  0x10   :  { %21 = vsyncpa [#allocation11], 0 }
  0x11   :  { %23 = vsyncpa [#allocation11 + $0x1], 0 }
  0x12   :  { %24 = vsyncpa [#allocation6], 0 }
  0x13   :  { %26 = vsyncpa [#allocation6 + $0x1], 0  ;;  %s1878_s13 = smov 0   ;;  %s1880_s14 = smov 0  }
  0x14   :  { %s1882_s15 = smov 0   ;;  %s1884_s16 = smov 0  }
  0x15   :  { %s1886_s17 = smov 0   ;;  %s1888_s18 = smov 0  }
  0x16   :  { %s1890_s19 = smov 0   ;;  %s1892_s20 = smov 0  }
  0x17   :  { %s1894_s21 = smov 0   ;;  %s1896_s22 = smov 0  }
  0x18   :  { %s1898_s23 = smov 0  }
  0x19 LB: > { %2297 = sst [smem:[#allocation18_spill]] %s1782_s16  ;;  %s1932_s24 = sadd.s32 4294967295, %s1810_s23   ;;  %s1810_s23 = sphi %s1898_s23, %s32_s23   ;;  %s1806_s22 = sphi %s1896_s22, %s2350_s22   ;;  %s1802_s21 = sphi %s1894_s21, %s2342_s21   ;;  %s1798_s20 = sphi %s1892_s20, %s2341_s20   ;;  %s1794_s19 = sphi %s1890_s19, %s2340_s19   ;;  %s1790_s18 = sphi %s1888_s18, %s2349_s18   ;;  %s1786_s17 = sphi %s1886_s17, %s2348_s17   ;;  %s1782_s16 = sphi %s1884_s16, %s2347_s16   ;;  %s1778_s15 = sphi %s1882_s15, %s2346_s15   ;;  %s1774_s14 = sphi %s1880_s14, %s2345_s14   ;;  %s1770_s13 = sphi %s1878_s13, %s2344_s13  }
  0x1a   : > { %2298 = sst [smem:[#allocation19_spill]] %s1798_s20  ;;  %s1305_s25 = sadd.s32 4294967294, %s1810_s23  }
  0x1b   : > { %2299 = sst [smem:[#allocation20_spill]] %s1802_s21  ;;  %p58_p0 = scmp.ne.s32.totalorder %s1790_s18, %s1786_s17 }
  0x1c   : > { %2300 = sst [smem:[#allocation21_spill]] %s1806_s22  ;;  %p59_p1 = scmp.eq.s32.totalorder %s1810_s23, 0 }
  0x1d   : > { %2301 = sst [smem:[#allocation22_spill]] %s1810_s23  ;;  %p64_p2 = scmp.ne.s32.totalorder %s1786_s17, %s1782_s16 }
  0x1e   : > { %p65_p3 = scmp.eq.s32.totalorder %s1932_s24, 0  ;;  %p1943_p4 = por %p59_p1, %p58_p0 }
  0x1f   : > { %p131_p5 = scmp.ne.s32.totalorder %s1778_s15, %s1774_s14  ;;  %p137_p7 = scmp.ne.s32.totalorder %s1774_s14, %s1770_s13 }
  0x20   : > { %p1949_p6 = por %p65_p3, %p64_p2  ;;  %p312_p9 = scmp.eq.s32.totalorder %s1932_s24, 3 }
  0x21   : > { %p1954_p8 = por %p131_p5, %p59_p1  ;;  %p1959_p10 = por %p137_p7, %p65_p3 }
  0x22   : > { %p318_p11 = scmp.eq.s32.totalorder %s1305_s25, 3  ;;  %p1963_p12 = por %p312_p9, %p58_p0 }
  0x23   : > { %p1426_p1 = scmp.lt.s32.totalorder %s1810_s23, 4  ;;  %s344_s13 = sand.u32 1, %s1790_s18  }
  0x24   : > { %s2306_s12 = scalar_select %p1963_p12, 1, 0 }
  0x25   : > { %p1967_p13 = por %p318_p11, %p64_p2  ;;  %s1309_s26 = sshll.u32 %s1806_s22, 3 }
  0x26   : > { %2307 = sst [smem:[#allocation23_spill]] %s2306_s12  ;;  %s1308_s16 = sshll.u32 %s344_s13, 3 }
  0x27   : > { %s2308_s27 = scalar_select %p1967_p13, 1, 0 }
  0x28   : > { %p1976_p3 = pnand %p1426_p1, %p1943_p4  ;;  %s363_s25 = sand.u32 1, %s1810_s23  }
  0x29   : > { %2309 = sst [smem:[#allocation24_spill]] %s2308_s27  ;;  %s367_s2 = scalar_lea.vmem [#allocation7], %s1308_s16 }
  0x2a   : > { %s2311_s1 = sld [smem:[#allocation29_spill]]  ;;  %s375_s8 = sshll.u32 %s367_s2, 4  ;;  %s376_s8 = int_to_ptr.vmem [resolvable:$true] %s375_s8 }
  0x2b   : > { %p1986_p0 = pnand %p1426_p1, %p1954_p8  ;;  %s1990_s5 = scalar_lea.sflag [#allocation8], %s363_s25 }
  0x2c   : > { %p1315_p2 = scmp.ge.s32.totalorder %s1810_s23, 1  ;;  %p449_p4 = scmp.lt.s32.totalorder %s1810_s23, 5 }
  0x2d   : > { %s2314_s0 = sld [smem:[#allocation28_spill]]  ;;  %s41_s23 = sadd.s32 1, %s1802_s21 }
  0x2e   : > { %p1997_p5 = pnand %p1315_p2, %p449_p4  ;;  %s2009_s4 = sand.u32 1, %s1778_s15  }
  0x2f   : > { %p42_p7 = scmp.ge.s32.totalorder %s41_s23, 2  ;;  %s2315_s3 = sld [smem:[#allocation31_spill]] }
  0x30   : > { %s371_s12 = scalar_lea.hbm %s2311_s1, %s1309_s26  ;;  %s385_s20 = scalar_lea.vmem [#allocation9], %s2009_s4 }
  0x31   : > { %s373_s27 = sshll.u32 %s371_s12, 4  ;;  %s348_s12 = scalar_lea.vmem [#allocation4], %s1308_s16  ;;  %s374_s27 = int_to_ptr.hbm [resolvable:$true] %s373_s27 }
  0x32   : > { %1415 = dma.hbm_to_vmem [thread:$0]  (!%p1976_p3), %s374_s27, 128, %s376_s8, %s1990_s5  }
  0x33   : > { %s352_s30 = scalar_lea.hbm %s2314_s0, %s1309_s26  ;;  %s356_s25 = sshll.u32 %s348_s12, 4  ;;  %s357_s25 = int_to_ptr.vmem [resolvable:$true] %s356_s25 }
  0x34   : > { %s354_s1 = sshll.u32 %s352_s30, 4  ;;  %s345_s8 = scalar_lea.sflag [#allocation5], %s344_s13  ;;  %s355_s1 = int_to_ptr.hbm [resolvable:$true] %s354_s1 }
  0x35   : > { %1412 = dma.hbm_to_vmem [thread:$0]  (!%p1976_p3), %s355_s1, 128, %s357_s25, %s345_s8  }
  0x36   : > { %s124_s27 = sadd.s32 1, %s1778_s15  ;;  %s388_s16 = scalar_lea.hbm %s2315_s3, %s1802_s21 }
  0x37   : > { %s392_s10 = sshll.u32 %s385_s20, 4  ;;  %s2352_s23 = smov (%p42_p7, %s41_s23), 0  ;;  %s393_s10 = int_to_ptr.vmem [resolvable:$true] %s392_s10 }
  0x38   : > { %2316 = sst [smem:[#allocation25_spill]] %s2352_s23  ;;  %s2317_s1 = sadd.s32 1, %s1806_s22 }
  0x39   : > { %s2354_s1 = smov (!%p42_p7, %s2317_s1), %s1806_s22  ;;  %s121_s13 = ssub.s32 %s1802_s21, %s2352_s23 }
  0x3a   : > { %s390_s30 = sshll.u32 %s388_s16, 4  ;;  %p46_p8 = scmp.ge.s32.totalorder %s2354_s1, 2  ;;  %s391_s30 = int_to_ptr.hbm [resolvable:$true] %s390_s30 }
  0x3b   : > { %p122_p9 = scmp.eq.s32.totalorder %s121_s13, 0  ;;  %s1312_s8 = sshll.u32 %s2009_s4, 4 }
  0x3c   : > { %s2356_s1 = smov (%p46_p8, %s2354_s1), 0  ;;  %s2320_s26 = sadd.s32 1, %s1790_s18 }
  0x3d   : > { %2318 = sst [smem:[#allocation26_spill]] %s2356_s1  ;;  %s48_s25 = ssub.s32 %s1806_s22, %s2356_s1 }
  0x3e   : > { %s2026_s12 = scalar_select %p122_p9, %s1778_s15, %s124_s27  }
  0x3f   : > { %p49_p11 = scmp.eq.s32.totalorder %s48_s25, 0  ;;  %s1385_s16 = sshll.u32 %s1802_s21, 4 }
  0x40   : > { %2319 = sst [smem:[#allocation27_spill]] %s2026_s12  ;;  %s425_s3 = scalar_lea.vmem [#allocation10], %s1312_s8 }
  0x41   : > { %1418 = dma.hbm_to_vmem [thread:$0]  (!%p1986_p0), %s391_s30, 16, %s393_s10, %s1990_s5  }
  0x42   : > { %s2037_s9 = scalar_select %p49_p11, %s1790_s18, %s2320_s26  }
  0x43   : > { %s2321_s7 = sld [smem:[#allocation35_spill]]  ;;  %s433_s23 = sshll.u32 %s425_s3, 4  ;;  %s434_s23 = int_to_ptr.vmem [resolvable:$true] %s433_s23 }
  0x44   : > { %s422_s27 = scalar_lea.sflag [#allocation11], %s2009_s4  ;;  %s1812_s12 = smov 64  }
  0x45   : > { %s1813_s1 = smov 4   ;;  %s2049_s5 = sand.u32 (!%p1997_p5), 1, %s1786_s17  }
  0x46   : > { %s2052_s10 = sshll.u32 (!%p1997_p5), %s2049_s5, 3 }
  0x47   : > { %453 = sbr.rel (%p1997_p5) target bundleno = 2071 (0x817), region = 60  ;;  %s459_s3 = scalar_lea.vmem (!%p1997_p5), [#allocation4], %s2052_s10 }
  0x49   : > { %s430_s0 = scalar_lea.hbm %s2321_s7, %s1385_s16 }
  0x4a   : > { %s431_s6 = sshll.u32 %s430_s0, 4  ;;  %s456_s0 = scalar_lea.sflag (!%p1997_p5), [#allocation5], %s2049_s5  ;;  %s432_s6 = int_to_ptr.hbm [resolvable:$true] %s431_s6 }
  0x4b   : > { %1421 = dma.hbm_to_vmem [thread:$0]  (!%p1986_p0), %s432_s6, 256, %s434_s23, %s422_s27, %s1812_s12, %s1812_s12, %s1813_s1  }
  0x4c   : > { %1749 = dma.done.wait (%p1949_p6), %s456_s0, 128  }
  0x4d   : > { %1751 = vsyncadd (%p1949_p6), %s456_s0, 4294967168  ;;  %s465_s4 = sand.u32 1, %s1932_s24  }
  0x4e   : > { %s466_s6 = scalar_lea.sflag [#allocation8], %s465_s4 }
  0x4f   : > { %1753 = dma.done.wait (%p1949_p6), %s466_s6, 128  }
  0x50   : > { %1755 = vsyncadd (%p1949_p6), %s466_s6, 4294967168  ;;  %s2067_s28 = sand.u32 1, %s1774_s14  }
  0x51   : > { %1757 = dma.done.wait (%p1959_p10), %s466_s6, 16  }
  0x52   : > { %1759 = vsyncadd (%p1959_p10), %s466_s6, 4294967280  ;;  %s1318_s24 = sshll.u32 %s2067_s28, 4  ;;  %s485_s1 = scalar_lea.sflag [#allocation11], %s2067_s28 }
  0x53   : > { %s2076_s30 = scalar_lea.vmem [#allocation10], %s1318_s24 }
  0x54   : > { %1761 = dma.done.wait (%p1959_p10), %s485_s1, 256  }
  0x55   : > { %1763 = vsyncadd (%p1959_p10), %s485_s1, 4294967040  ;;  %p558_p6 = scmp.lt.s32.totalorder %s1794_s19, 1  ;;  %s2322_s26 = sld [smem:[#allocation34_spill]] }
  0x56   : > { %s2323_s27 = sld [smem:[#allocation32_spill]]  ;;  %s557_s21 = scalar_lea.vmem [#allocation12], %s2052_s10 }
  0x57   : > { %s2084_s29 = scalar_select %p558_p6, %s1794_s19, 1 }
  0x58   : > { %s2324_s6 = sld [smem:[#allocation33_spill]]  ;;  %p1326_p10 = scmp.ne.s32.totalorder %s1794_s19, 0 }
  0x59   : > { %s1386_s12 = sshll.u32 %s2084_s29, 4  ;;  %s1388_s1 = sshll.u32 %s2084_s29, 5 }
  0x5a   : > { %s2325_s7 = sld [smem:[#allocation36_spill]]  ;;  %s2326_s25 = scalar_lea.vmem (!%p1326_p10), [#allocation7], %s2052_s10 }
  0x5b   : > { %s570_s16 = scalar_lea.vmem %s2322_s26, %s2084_s29 }
  0x5c   : > { %s562_s0 = scalar_lea.vmem %s2323_s27, %s1386_s12  ;;  %580 = sbr.rel (%p1326_p10) target bundleno = 103 (0x67), region = 80 }
  0x5e   : > { %s2097_s24 = scalar_lea.vmem %s2324_s6, %s1386_s12 }
  0x60   : > { %s2103_s22 = scalar_lea.vmem %s2325_s7, %s1388_s1 }
  0x61   : > { %v581_v0 = vld [vmem:[%s459_s3] sm:$0xff]  ;;  %vm582_vm0 = vcmask 261120   ;;  %v584_v1 = vld [vmem:[%s2326_s25] sm:$0xff]  ;;  %vm587_vm1 = vcmask 64512  }
  0x62   : > { %583 = vst.msk [vmem:[#allocation2] sm:$0xff] %vm582_vm0, %v581_v0  ;;  %v1327_v2 = vadd.f32 -1.0, %v584_v1 }
  0x64   : > { %v586_v3 = vmul.f32 1e+30, %v1327_v2 }
  0x66   : > { %588 = vst.msk [vmem:[#allocation3] sm:$0xff] %vm587_vm1, %v586_v3 }
  0x67 PF: > { %vm593_vm2 = vcmask 261120   ;;  %v1814_v7 = vmov 32.0   ;;  %v1390_v11 = vld [vmem:[%s562_s0 + $0x8] sm:$0xff]  ;;  %v1389_v13 = vld [vmem:[%s562_s0] sm:$0xff]  ;;  %s2327_s7 = scalar_lea.vmem [#allocation9], %s2067_s28  ;;  %s1815_s3 = smov 112  }
  0x68   : > { %1529 = vrcp.f32 %v1814_v7  ;;  %647 = vmatpush.bf16.msra.mxu0 %v1390_v11  ;;  %v1527_v25 = vld [vmem:[%s2327_s7] ss:$0 sm:$0xff]  ;;  %s1816_s23 = smov 120   ;;  %s1817_s2 = smov 104   ;;  %vm670_vm7 = vcmask 64512   ;;  %vm821_vm8 = vcmask 1043456  }
  0x69   : > { %v2109_v4 = vld [vmem:[#allocation2] sm:$0xff]  ;;  %s1818_s28 = smov 96   ;;  %s2328_s26 = sld [smem:[#allocation30_spill]]  ;;  %vm914_vm9 = vcmask 130048   ;;  %vm916_vm10 = vcmask 195584   ;;  %vm1054_vm14 = vcmask 523264  }
  0x6a   : > { %v592_v5 = vmul.f32 %v2109_v4, %v2109_v4  ;;  %s1819_s6 = smov 64   ;;  %s2329_s1 = scalar_lea.vmem [#allocation7], %s2052_s10 }
  0x6b   : > { %s1820_s25 = smov 8   ;;  %s1821_s7 = smov 16  }
  0x6c   : > { %v594_v6 = vsel %vm593_vm2, %v592_v5, 0.0  ;;  %648 = vmatpush.bf16.msra.mxu0 %v1389_v13  ;;  %p1380_p1 = scmp.ne.s32.totalorder %s1794_s19, 1 }
  0x6d   : > { %595 = vadd.xlane.f32.xlu0 %v594_v6  ;;  %v759_v54 = vld [vmem:[#allocation3] sm:$0xff]  ;;  %s2331_s29 = sld [smem:[#allocation37_spill]] (!%p1380_p1) }
  0x6e   : > { %v1530_v8 = vpop.eup %1529 }
  0x6f   : > { %v598_v9 = vmul.f32 32.0, %v1530_v8  ;;  %vm602_vm3 = vweird.f32 %v1530_v8  ;;  %v663_v52 = vld [vmem:[%s2328_s26 + $0x8] sm:$0xff]  ;;  %v664_v58 = vld [vmem:[%s2328_s26 + $0x10] sm:$0xff]  ;;  %v662_v62 = vld [vmem:[%s2328_s26] sm:$0xff] }
  0x71   : > { %v599_v10 = vsub.f32 1.0, %v598_v9 }
  0x73   : > { %v600_v12 = vmul.f32 %v1530_v8, %v599_v10 }
  0x75   : > { %v601_v14 = vadd.f32 %v1530_v8, %v600_v12 }
  0x77   : > { %v2114_v15 = vsel %vm602_vm3, %v1530_v8, %v601_v14  ;;  %v665_v8 = vld [vmem:[%s2328_s26 + $0x18] sm:$0xff] }
  0xe0   : > { %v596_v16 = vpop.xlane.xlu0 %595 }
  0xe1   : > { %v604_v17 = vmul.f32 %v2114_v15, %v596_v16 }
  0xe3   : > { %v605_v18 = vadd.f32 1e-06, %v604_v17 }
  0xe5   : > { %1531 = vrsqrt.f32 %v605_v18  ;;  %vm612_vm5 = vweird.f32 %v605_v18 }
  0xeb   : > { %v1532_v19 = vpop.eup %1531 }
  0xec   : > { %v607_v20 = vmul.f32 %v1532_v19, %v605_v18  ;;  %vm613_vm4 = vweird.f32 %v1532_v19 }
  0xed   : > { %vm614_vm6 = vmor %vm612_vm5, %vm613_vm4 }
  0xee   : > { %v608_v21 = vmul.f32 %v1532_v19, %v607_v20 }
  0xf0   : > { %v609_v22 = vmul.f32 0.5, %v608_v21 }
  0xf2   : > { %v610_v23 = vsub.f32 1.5, %v609_v22 }
  0xf4   : > { %v611_v24 = vmul.f32 %v1532_v19, %v610_v23 }
  0xf6   : > { %v615_v26 = vsel %vm614_vm6, %v1532_v19, %v611_v24 }
  0xf7   : > { %v616_v27 = vmul.f32 %v615_v26, %v2109_v4 }
  0xf9   : > { %v620_v28 = vmul.f32 %v1527_v25, %v616_v27 }
  0xfb   : > { %v621_v29 = vpack.c.bf16 %v620_v28, %v620_v28 }
  0xfd   : > { %1336 = vmatmul.msk.bf16.vlgmr.msra.gmra.mxu0 %vm593_vm2, %v621_v29 }
 0x17a   : > { %v650_v30 = vpop.f32.mrf.mxu0 }
 0x17b   : > { %v654_v31 = vpack.c.bf16 %v650_v30, %v650_v30 }
 0x17d   : > { %658 = vrot.lane.b32.xlu1 %v654_v31, %s1815_s3  ;;  %656 = vrot.lane.b32.xlu0 %v654_v31, %s1816_s23  ;;  %v666_v42 = vunpack.c.l.b16 %v654_v31  ;;  %s1822_s3 = smov 24  }
 0x17f   : > { %v2130_v43 = vpack.c.b16 %v666_v42, %v666_v42 }
 0x182   : > { %v652_v32 = vpop.f32.mrf.mxu0 }
 0x185   : > { %660 = vrot.lane.b32.xlu1 %v654_v31, %s1817_s2 }
 0x1ef   : > { %v659_v33 = vpop.permute.xlu1 %658  ;;  %v657_v34 = vpop.permute.xlu0 %656 }
 0x1f0   : > { %v690_v35 = vunpack.c.l.b16 %v657_v34  ;;  %v713_v37 = vunpack.c.l.b16 %v659_v33 }
 0x1f2   : > { %v2121_v36 = vpack.c.b16 %v690_v35, %v690_v35  ;;  %v2124_v40 = vpack.c.b16 %v713_v37, %v713_v37 }
 0x1f4   : > { %692 = vrot.lane.b32.xlu2 %v2121_v36, %s1818_s28 }
 0x1f7   : > { %v661_v38 = vpop.permute.xlu1 %660 }
 0x1f8   : > { %v736_v39 = vunpack.c.l.b16 %v661_v38 }
 0x1fa   : > { %v2126_v41 = vpack.c.b16 %v736_v39, %v736_v39 }
 0x1fc   : > { %738 = vrot.lane.b32.xlu1 %v2126_v41, %s1818_s28  ;;  %715 = vrot.lane.b32.xlu2 %v2124_v40, %s1818_s28 }
 0x204   : > { %668 = vrot.lane.b32.xlu2 %v2130_v43, %s1818_s28 }
 0x24e   : > { %v693_v44 = vpop.permute.xlu2 %692 }
 0x24f   : > { %v698_v45 = vsel %vm670_vm7, %v693_v44, 0 }
 0x250   : > { %707 = vmatpush.bf16.xpose.msra.mxu2 %v698_v45 }
 0x256   : > { %v716_v46 = vpop.permute.xlu2 %715 }
 0x257   : > { %1338 = vmatmul.msk.bf16.vlgmr.msra.gmra.mxu2 %vm670_vm7, %v657_v34  ;;  %v721_v47 = vsel %vm670_vm7, %v716_v46, 0 }
 0x258   : > { %730 = vmatpush.bf16.xpose.msra.mxu3 %v721_v47 }
 0x25e   : > { %v669_v48 = vpop.permute.xlu2 %668 }
 0x25f   : > { %1339 = vmatmul.msk.bf16.vlgmr.msra.gmra.mxu3 %vm670_vm7, %v659_v33  ;;  %v675_v49 = vsel %vm670_vm7, %v669_v48, 0 }
 0x260   : > { %684 = vmatpush.bf16.xpose.msra.mxu1 %v675_v49 }
 0x267   : > { %1337 = vmatmul.msk.bf16.vlgmr.msra.gmra.mxu1 %vm670_vm7, %v654_v31 }
 0x26e   : > { %v739_v50 = vpop.permute.xlu1 %738 }
 0x26f   : > { %v744_v51 = vsel %vm670_vm7, %v739_v50, 0 }
 0x270   : > { %753 = vmatpush.bf16.xpose.msrb.mxu0 %v744_v51 }
 0x277   : > { %1340 = vmatmul.msk.bf16.vlgmr.msrb.gmra.mxu0 %vm670_vm7, %v661_v38 }
 0x2da   : > { %v709_v53 = vpop.f32.mrf.mxu2 }
 0x2db   : > { %v710_v55 = vadd.f32 %v709_v53, %v663_v52 }
 0x2dd   : > { %v761_v56 = vadd.f32 %v759_v54, %v710_v55 }
 0x2df   : > { %v767_v57 = vsel %vm670_vm7, %v761_v56, -inf }
 0x2e0   : > { %768 = vmax.xlane.f32.xlu1 %v767_v57 }
 0x2e2   : > { %v711_v59 = vpop.f32.mrf.mxu2  ;;  %v732_v60 = vpop.f32.mrf.mxu3 }
 0x2e3   : > { %v733_v61 = vadd.f32 %v732_v60, %v664_v58 }
 0x2e4   : > { %v686_v63 = vpop.f32.mrf.mxu1 }
 0x2e5   : > { %v762_v0 = vadd.f32 %v759_v54, %v733_v61  ;;  %v687_v1 = vadd.f32 %v686_v63, %v662_v62 }
 0x2e7   : > { %v770_v2 = vsel %vm670_vm7, %v762_v0, -inf  ;;  %v760_v5 = vadd.f32 %v759_v54, %v687_v1 }
 0x2e8   : > { %771 = vmax.xlane.f32.xlu2 %v770_v2 }
 0x2e9   : > { %v764_v7 = vsel %vm670_vm7, %v760_v5, -inf }
 0x2ea   : > { %v734_v3 = vpop.f32.mrf.mxu3 }
 0x2ec   : > { %v688_v6 = vpop.f32.mrf.mxu1 }
 0x2f0   : > { %765 = vmax.xlane.f32.xlu2 %v764_v7 }
 0x2f4   : > { %v755_v9 = vpop.f32.mrf.mxu0 }
 0x2f5   : > { %v756_v10 = vadd.f32 %v755_v9, %v665_v8  ;;  %v1392_v9 = vld [vmem:[%s2097_s24 + $0x8] sm:$0xff] }
 0x2f7   : > { %v763_v11 = vadd.f32 %v759_v54, %v756_v10  ;;  %v1391_v10 = vld [vmem:[%s2097_s24] sm:$0xff] }
 0x2f9   : > { %v773_v12 = vsel %vm670_vm7, %v763_v11, -inf }
 0x2fa   : > { %774 = vmax.xlane.f32.xlu0 %v773_v12 }
 0x2fc   : > { %v757_v13 = vpop.f32.mrf.mxu0 }
 0x353   : > { %v769_v14 = vpop.xlane.xlu1 %768 }
 0x354   : > { %v777_v16 = vsub.f32 %v761_v56, %v769_v14 }
 0x356   : > { %v782_v17 = vmul.f32 1.442695, %v777_v16 }
 0x358   : > { %1533 = vpow2.f32 %v782_v17 }
 0x35b   : > { %v772_v18 = vpop.xlane.xlu2 %771 }
 0x35c   : > { %v778_v19 = vsub.f32 %v762_v0, %v772_v18 }
 0x35e   : > { %v1534_v20 = vpop.eup %1533  ;;  %v784_v21 = vmul.f32 1.442695, %v778_v19 }
 0x35f   : > { %v791_v22 = vsel %vm670_vm7, %v1534_v20, 0.0 }
 0x360   : > { %1535 = vpow2.f32 %v784_v21  ;;  %792 = vadd.xlane.f32.xlu1 %v791_v22 }
 0x363   : > { %v766_v30 = vpop.xlane.xlu2 %765 }
 0x364   : > { %v776_v31 = vsub.f32 %v760_v5, %v766_v30 }
 0x366   : > { %v1536_v23 = vpop.eup %1535  ;;  %v780_v32 = vmul.f32 1.442695, %v776_v31 }
 0x367   : > { %v794_v24 = vsel %vm670_vm7, %v1536_v23, 0.0 }
 0x368   : > { %795 = vadd.xlane.f32.xlu0 %v794_v24  ;;  %v1394_v24 = vld [vmem:[%s2076_s30 + $0x8] sm:$0xff] }
 0x36d   : > { %v775_v25 = vpop.xlane.xlu0 %774 }
 0x36e   : > { %v779_v26 = vsub.f32 %v763_v11, %v775_v25  ;;  %v1393_v25 = vld [vmem:[%s2076_s30] sm:$0xff] }
 0x370   : > { %v786_v27 = vmul.f32 1.442695, %v779_v26 }
 0x372   : > { %1537 = vpow2.f32 %v786_v27 }
 0x373   : > { %1539 = vpow2.f32 %v780_v32 }
 0x378   : > { %v1538_v28 = vpop.eup %1537 }
 0x379   : > { %838 = vrot.lane.b32.xlu1 %v2121_v36, %s1819_s6  ;;  %v797_v29 = vsel %vm670_vm7, %v1538_v28, 0.0  ;;  %v1540_v33 = vpop.eup %1539 }
 0x37a   : > { %798 = vadd.xlane.f32.xlu2 %v797_v29  ;;  %v788_v34 = vsel %vm670_vm7, %v1540_v33, 0.0 }
 0x37c   : > { %859 = vrot.lane.b32.xlu0 %v2124_v40, %s1819_s6  ;;  %v590_v40 = vld [vmem:[%s2329_s1] sm:$0xff] }
 0x381   : > { %816 = vrot.lane.b32.xlu1 %v2130_v43, %s1819_s6 }
 0x392   : > { %880 = vrot.lane.b32.xlu2 %v2126_v41, %s1819_s6 }
 0x3a6   : > { %789 = vadd.xlane.f32.xlu0 %v788_v34  ;;  %v1528_v34 = vld [vmem:[%s570_s16] ss:$0 sm:$0xff] }
 0x3d3   : > { %v793_v35 = vpop.xlane.xlu1 %792 }
 0x3d4   : > { %1541 = vrcp.f32 %v793_v35 }
 0x3da   : > { %v1542_v37 = vpop.eup %1541 }
 0x3db   : > { %v796_v36 = vpop.xlane.xlu0 %795  ;;  %v805_v39 = vmul.f32 %v1542_v37, %v1534_v20 }
 0x3dc   : > { %1543 = vrcp.f32 %v796_v36 }
 0x3dd   : > { %v809_v43 = vmul.f32 %v805_v39, %v590_v40  ;;  %v1398_v39 = vld [vmem:[%s2103_s22 + $0x18] sm:$0xff] }
 0x3df   : > { %v813_v48 = vpack.c.bf16 %v809_v43, %v809_v43 }
 0x3e2   : > { %v1544_v38 = vpop.eup %1543 }
 0x3e3   : > { %v806_v42 = vmul.f32 %v1544_v38, %v1536_v23 }
 0x3e5   : > { %v810_v46 = vmul.f32 %v806_v42, %v590_v40  ;;  %v1396_v42 = vld [vmem:[%s2103_s22 + $0x8] sm:$0xff] }
 0x3e7   : > { %v814_v50 = vpack.c.bf16 %v810_v46, %v810_v46 }
 0x3eb   : > { %v839_v41 = vpop.permute.xlu1 %838 }
 0x3ec   : > { %v844_v44 = vsel %vm821_vm8, %v839_v41, 0 }
 0x3ed   : > { %853 = vmatpush.bf16.msrb.mxu2 %v844_v44  ;;  %v799_v45 = vpop.xlane.xlu2 %798 }
 0x3ee   : > { %1545 = vrcp.f32 %v799_v45  ;;  %v860_v47 = vpop.permute.xlu0 %859  ;;  %v1395_v45 = vld [vmem:[%s2103_s22] sm:$0xff] }
 0x3ef   : > { %v865_v49 = vsel %vm821_vm8, %v860_v47, 0 }
 0x3f0   : > { %1342 = vmatmul.msk.bf16.vlgmr.msrb.gmra.mxu2 %vm670_vm7, %v813_v48  ;;  %874 = vmatpush.bf16.msrb.mxu3 %v865_v49 }
 0x3f1   : > { %1000 = vmatpush.bf16.msra.mxu2 %v1394_v24 }
 0x3f3   : > { %v817_v51 = vpop.permute.xlu1 %816  ;;  %1343 = vmatmul.msk.bf16.vlgmr.msrb.gmra.mxu3 %vm670_vm7, %v814_v50 }
 0x3f4   : > { %v1546_v52 = vpop.eup %1545  ;;  %v823_v53 = vsel %vm821_vm8, %v817_v51, 0  ;;  %1062 = vmatpush.bf16.msra.mxu3 %v1398_v39 }
 0x3f5   : > { %v807_v54 = vmul.f32 %v1546_v52, %v1538_v28  ;;  %832 = vmatpush.bf16.msrb.mxu1 %v823_v53  ;;  %v881_v55 = vpop.permute.xlu2 %880  ;;  %1001 = vmatpush.bf16.msra.mxu2 %v1393_v25 }
 0x3f6   : > { %v886_v56 = vsel %vm821_vm8, %v881_v55, 0 }
 0x3f7   : > { %v811_v57 = vmul.f32 %v807_v54, %v590_v40  ;;  %895 = vmatpush.bf16.msra.mxu0 %v886_v56 }
 0x3f9   : > { %v815_v58 = vpack.c.bf16 %v811_v57, %v811_v57  ;;  %944 = vmatpush.bf16.msra.mxu1 %v1392_v9 }
 0x3fb   : > { %1344 = vmatmul.msk.bf16.vlgmr.msra.gmra.mxu0 %vm670_vm7, %v815_v58 }
 0x3fd   : > { %945 = vmatpush.bf16.msra.mxu1 %v1391_v10 }
 0x419   : > { %v790_v59 = vpop.xlane.xlu0 %789 }
 0x41a   : > { %1547 = vrcp.f32 %v790_v59 }
 0x420   : > { %v1548_v60 = vpop.eup %1547 }
 0x421   : > { %v804_v61 = vmul.f32 %v1548_v60, %v1540_v33 }
 0x423   : > { %v808_v62 = vmul.f32 %v804_v61, %v590_v40  ;;  %v1397_v40 = vld [vmem:[%s2103_s22 + $0x10] sm:$0xff] }
 0x424   : > { %1063 = vmatpush.bf16.msra.mxu3 %v1397_v40 }
 0x425   : > { %v812_v63 = vpack.c.bf16 %v808_v62, %v808_v62 }
 0x427   : > { %1341 = vmatmul.msk.bf16.vlgmr.msrb.gmra.mxu1 %vm670_vm7, %v812_v63 }
 0x428   : > { %1064 = vmatpush.bf16.msra.mxu3 %v1396_v42 }
 0x42c   : > { %1065 = vmatpush.bf16.msra.mxu3 %v1395_v45 }
 0x473   : > { %v855_v0 = vpop.f32.mrf.mxu2 }
 0x474   : > { %902 = vrot.lane.b32.xlu2 %v855_v0, %s1820_s25 }
 0x476   : > { %v876_v1 = vpop.f32.mrf.mxu3 }
 0x477   : > { %906 = vrot.lane.b32.xlu1 %v876_v1, %s1821_s7 }
 0x478   : > { %v897_v2 = vpop.f32.mrf.mxu0 }
 0x47b   : > { %v857_v3 = vpop.f32.mrf.mxu2 }
 0x47c   : > { %910 = vrot.lane.b32.xlu2 %v897_v2, %s1822_s3 }
 0x47e   : > { %v878_v5 = vpop.f32.mrf.mxu3 }
 0x480   : > { %v899_v6 = vpop.f32.mrf.mxu0 }
 0x4a4   : > { %v834_v7 = vpop.f32.mrf.mxu1 }
 0x4ac   : > { %v836_v8 = vpop.f32.mrf.mxu1 }
 0x4ce   : > { %v903_v11 = vpop.permute.xlu2 %902 }
 0x4cf   : > { %v913_v12 = vsel %vm670_vm7, %v834_v7, %v903_v11 }
 0x4d6   : > { %v911_v14 = vpop.permute.xlu2 %910 }
 0x4e9   : > { %v907_v13 = vpop.permute.xlu1 %906 }
 0x4ea   : > { %v915_v16 = vsel %vm914_vm9, %v913_v12, %v907_v13 }
 0x4eb   : > { %v917_v17 = vsel %vm916_vm10, %v915_v16, %v911_v14 }
 0x4ec   : > { %v918_v18 = vpack.c.bf16 %v917_v17, %v917_v17 }
 0x4ee   : > { %1353 = vmatmul.msk.bf16.vlgmr.msra.gmra.mxu1 %vm593_vm2, %v918_v18 }
 0x56b   : > { %v947_v19 = vpop.f32.mrf.mxu1 }
 0x56c   : > { %v951_v20 = vadd.f32 %v947_v19, %v2109_v4 }
 0x56e   : > { %v953_v21 = vmul.f32 %v951_v20, %v951_v20 }
 0x570   : > { %v954_v22 = vsel %vm593_vm2, %v953_v21, 0.0 }
 0x571   : > { %955 = vadd.xlane.f32.xlu1 %v954_v22 }
 0x573   : > { %v949_v23 = vpop.f32.mrf.mxu1 }
 0x5e4   : > { %v956_v26 = vpop.xlane.xlu1 %955 }
 0x5e5   : > { %v957_v27 = vmul.f32 %v956_v26, %v2114_v15 }
 0x5e7   : > { %v958_v28 = vadd.f32 1e-06, %v957_v27 }
 0x5e9   : > { %1549 = vrsqrt.f32 %v958_v28  ;;  %vm965_vm12 = vweird.f32 %v958_v28 }
 0x5ef   : > { %v1550_v29 = vpop.eup %1549 }
 0x5f0   : > { %v960_v30 = vmul.f32 %v1550_v29, %v958_v28  ;;  %vm966_vm11 = vweird.f32 %v1550_v29 }
 0x5f1   : > { %vm967_vm13 = vmor %vm965_vm12, %vm966_vm11 }
 0x5f2   : > { %v961_v4 = vmul.f32 %v1550_v29, %v960_v30 }
 0x5f4   : > { %v962_v31 = vmul.f32 0.5, %v961_v4 }
 0x5f6   : > { %v963_v32 = vsub.f32 1.5, %v962_v31 }
 0x5f8   : > { %v964_v33 = vmul.f32 %v1550_v29, %v963_v32 }
 0x5fa   : > { %v968_v35 = vsel %vm967_vm13, %v1550_v29, %v964_v33 }
 0x5fb   : > { %v969_v36 = vmul.f32 %v968_v35, %v951_v20 }
 0x5fd   : > { %v973_v37 = vmul.f32 %v1528_v34, %v969_v36 }
 0x5ff   : > { %v974_v38 = vpack.c.bf16 %v973_v37, %v973_v37 }
 0x601   : > { %1362 = vmatmul.msk.bf16.vlgmr.msra.gmra.mxu2 %vm593_vm2, %v974_v38 }
 0x684   : > { %v1003_v43 = vpop.f32.mrf.mxu2 }
 0x685   : > { %1017 = vrot.lane.b32.xlu2 %v1003_v43, %s1819_s6  ;;  %v1008_v44 = vmul.f32 0.044715, %v1003_v43  ;;  %v1007_v52 = vmul.f32 0.5, %v1003_v43 }
 0x687   : > { %v1009_v46 = vmul.f32 %v1008_v44, %v1003_v43 }
 0x689   : > { %v1010_v47 = vmul.f32 %v1009_v46, %v1003_v43 }
 0x68b   : > { %v1011_v48 = vadd.f32 %v1010_v47, %v1003_v43 }
 0x68c   : > { %v1005_v41 = vpop.f32.mrf.mxu2 }
 0x68d   : > { %v1012_v49 = vmul.f32 0.7978846, %v1011_v48 }
 0x68f   : > { %1551 = vtanh.f32 %v1012_v49 }
 0x695   : > { %v1552_v50 = vpop.eup %1551 }
 0x696   : > { %v1014_v51 = vadd.f32 1.0, %v1552_v50 }
 0x698   : > { %v1015_v53 = vmul.f32 %v1014_v51, %v1007_v52 }
 0x6df   : > { %v1018_v54 = vpop.permute.xlu2 %1017 }
 0x6e0   : > { %v1020_v55 = vmul.f32 %v1018_v54, %v1015_v53 }
 0x6e2   : > { %v1021_v56 = vpack.c.bf16 %v1020_v55, %v1020_v55 }
 0x6e4   : > { %1379 = vmatmul.msk.bf16.vlgmr.msra.gmra.mxu3 %vm1054_vm14, %v1021_v56 }
 0x767   : > { %v1067_v57 = vpop.f32.mrf.mxu3 }
 0x768   : > { %v1071_v58 = vadd.f32 %v1067_v57, %v951_v20 }
 0x76a   : > { %1072 = vst.msk [vmem:[#allocation2] sm:$0xff] %vm593_vm2, %v1071_v58 }
 0x76b   : > { %1076 = sbr.rel (%p1380_p1) target bundleno = 2050 (0x802), region = 84 }
 0x76f   : > { %v1069_v59 = vpop.f32.mrf.mxu3 }
 0x770   : > { %v1078_v60 = vmul.f32 %v1071_v58, %v1071_v58  ;;  %v1553_v8 = vld [vmem:[%s2331_s29] ss:$0 sm:$0xff] }
 0x772   : > { %v1079_v61 = vsel %vm593_vm2, %v1078_v60, 0.0 }
 0x773   : > { %1080 = vadd.xlane.f32.xlu0 %v1079_v61 }
 0x7e6   : > { %v1081_v62 = vpop.xlane.xlu0 %1080 }
 0x7e7   : > { %v1082_v63 = vmul.f32 %v1081_v62, %v2114_v15 }
 0x7e9   : > { %v1083_v0 = vadd.f32 1e-06, %v1082_v63 }
 0x7eb   : > { %1554 = vrsqrt.f32 %v1083_v0  ;;  %vm1090_vm0 = vweird.f32 %v1083_v0 }
 0x7f1   : > { %v1555_v1 = vpop.eup %1554 }
 0x7f2   : > { %v1085_v2 = vmul.f32 %v1555_v1, %v1083_v0  ;;  %vm1091_vm15 = vweird.f32 %v1555_v1 }
 0x7f3   : > { %vm1092_vm1 = vmor %vm1090_vm0, %vm1091_vm15 }
 0x7f4   : > { %v1086_v3 = vmul.f32 %v1555_v1, %v1085_v2 }
 0x7f6   : > { %v1087_v5 = vmul.f32 0.5, %v1086_v3 }
 0x7f8   : > { %v1088_v6 = vsub.f32 1.5, %v1087_v5 }
 0x7fa   : > { %v1089_v7 = vmul.f32 %v1555_v1, %v1088_v6 }
 0x7fc   : > { %v1093_v9 = vsel %vm1092_vm1, %v1555_v1, %v1089_v7 }
 0x7fd   : > { %v1094_v10 = vmul.f32 %v1093_v9, %v1071_v58 }
 0x7ff   : > { %v1098_v11 = vmul.f32 %v1553_v8, %v1094_v10 }
 0x801   : > { %1099 = vst.msk [vmem:[%s557_s21] sm:$0xff] %vm593_vm2, %v1098_v11 }
 0x802 PF: > { %s2332_s16 = sld [smem:[#allocation19_spill]]  ;;  %s1113_s0 = sshll.u32 %s557_s21, 4  ;;  %s1114_s0 = int_to_ptr.vmem [resolvable:$true] %s1113_s0 }
 0x803   : > { %s2334_s20 = sld [smem:[#allocation38_spill]]  ;;  %s1101_s4 = scalar_lea.sflag [#allocation6], %s2049_s5 }
 0x808   : > { %s1382_s28 = sshll.u32 %s2332_s16, 3 }
 0x809   : > { %s2335_s27 = smov %s2334_s20  ;;  %s1111_s13 = scalar_lea.hbm %s2334_s20, %s1382_s28 }
 0x80a   : > { %s1115_s11 = sshll.u32 %s1111_s13, 4  ;;  %s1696_s3 = scalar_lea.hbm %s2335_s27, 16  ;;  %s1116_s11 = int_to_ptr.hbm [resolvable:$true] %s1115_s11 }
 0x80b   : > { %s1690_s6 = sshra.s32 %s1116_s11, 4  ;;  %s1691_s6 = int_to_ptr.hbm [resolvable:$true] %s1690_s6 }
 0x80c   : > { %s1692_s1 = scalar_lea.hbm %s1691_s6, 8  ;;  %p1697_p4 = scmp.lt.s32.totalorder %s1691_s6, %s2335_s27 }
 0x80d   : > { %p1693_p3 = scmp.ne.s32.totalorder %s1691_s6, %s1692_s1  ;;  %p1698_p5 = scmp.lt.s32.totalorder %s1696_s3, %s1692_s1 }
 0x80f   : > { %p1694_p0 = pnand %p1693_p3, %p1963_p12  ;;  %p1699_p7 = por %p1698_p5, %p1697_p4 }
 0x811   : > { %p1695_p2 = pneg %p1694_p0 }
 0x813   : > { %p1700_p8 = pnand %p1699_p7, %p1695_p2 }
 0x815   : > { %1703 = shalt.err (!%p1700_p8)
}
 0x816   : > { %1407 = dma.vmem_to_hbm [thread:$0]  (%p1963_p12), %s1114_s0, 128, %s1116_s11, %s1101_s4  }
 0x817 PF: > { %s2336_s21 = sld [smem:[#allocation22_spill]] }
 0x818   : > { %s2337_s5 = sld [smem:[#allocation18_spill]] }
 0x81d   : > { %p1427_p9 = scmp.ge.s32.totalorder %s2336_s21, 2 }
 0x81e   : > { %s1127_s30 = sand.u32 1, %s2337_s5  }
 0x81f   : > { %p1423_p11 = pnand %p1427_p9, %p1967_p13  ;;  %s1128_s19 = scalar_lea.sflag [#allocation6], %s1127_s30 }
 0x821   : > { %p1424_p6 = pneg %p1423_p11 }
 0x823   : > { %1765 = dma.done.wait (%p1424_p6), %s1128_s19, 128  }
 0x824   : > { %1767 = vsyncadd (%p1424_p6), %s1128_s19, 4294967168  ;;  %s32_s23 = sadd.s32 1, %s2336_s21   ;;  %s2339_s22 = sld [smem:[#allocation27_spill]] }
 0x825   : > { %p29_p10 = scmp.ge.s32.totalorder %s32_s23, 6   ;;  %s2340_s19 = sld [smem:[#allocation20_spill]] }
 0x826   : > { %s2341_s20 = sld [smem:[#allocation21_spill]]  ;;  %s2344_s13 = smov %s1774_s14 }
 0x827   : > { %s2342_s21 = sld [smem:[#allocation25_spill]]  ;;  %s2345_s14 = smov %s1778_s15 }
 0x828   : > { %s2343_s29 = sld [smem:[#allocation26_spill]]  ;;  %s2347_s16 = smov %s1786_s17 }
 0x829   : > { %s2348_s17 = smov %s1790_s18  ;;  %s2349_s18 = smov %s2037_s9 }
 0x82a   : > { %s2346_s15 = smov %s2339_s22  ;;  %31 = sbr.rel (!%p29_p10) target bundleno = 25 (0x19), region = 162 }
 0x82e   : > { %s2350_s22 = smov %s2343_s29 }
 0x82f   :  { %1134 = vsyncpa [#allocation5], 1 }
 0x830   :  { %1136 = vsyncpa [#allocation5 + $0x1], 1 }
 0x831   :  { %1137 = vsyncpa [#allocation8], 1 }
 0x832   :  { %1139 = vsyncpa [#allocation8 + $0x1], 1 }
 0x833   :  { %1140 = vsyncpa [#allocation11], 1 }
 0x834   :  { %1142 = vsyncpa [#allocation11 + $0x1], 1 }
 0x835   :  { %1143 = vsyncpa [#allocation6], 1 }
 0x836   :  { %1145 = vsyncpa [#allocation6 + $0x1], 1 }

</bundles_post_ra>
